<compile_context>
chip_gen: v7x
topology: tpu7x:2x2x1
jax: 0.10.0
libtpu: 0.0.40
codegen_flags: <defaults>
</compile_context>

<pallas_src>
import functools

import jax
import jax.numpy as jnp
from jax.experimental import pallas as pl
from jax.experimental.pallas import tpu as pltpu

LANES = 128
SUBLANES = 8


def _round_up(v, m):
    return ((v + m - 1) // m) * m


def _charbonnier_kernel(x_ref, y_ref, out_ref, *, eps, n_rows, tile_rows,
                        chunk, blocks_per_p, num_blocks, need_mask, padded):
    p = pl.program_id(0)
    k = pl.program_id(1)
    block_idx = p * blocks_per_p + k

    @pl.when(k == 0)
    def _():
        out_ref[...] = jnp.zeros_like(out_ref)

    n_chunks = tile_rows // chunk
    unroll = min(8, n_chunks)

    def accumulate(masked):
        def body(i, acc):
            r0 = pl.multiple_of(i * chunk, chunk)
            x = x_ref[pl.ds(r0, chunk), :].astype(jnp.float32)
            y = y_ref[pl.ds(r0, chunk), :].astype(jnp.float32)
            d = x - y
            v = jnp.sqrt(d * d + jnp.float32(eps))
            if masked:
                row = (block_idx * tile_rows + r0
                       + jax.lax.broadcasted_iota(jnp.int32, (chunk, LANES), 0))
                v = jnp.where(row < n_rows, v, jnp.float32(0.0))
            # Fold (chunk, 128) -> (8, 128) with VPU adds (sublane-split reshape).
            return acc + v.reshape(chunk // SUBLANES, SUBLANES, LANES).sum(axis=0)

        acc = jax.lax.fori_loop(
            0, n_chunks, body,
            jnp.zeros((SUBLANES, LANES), jnp.float32),
            unroll=unroll)
        out_ref[...] += acc

    last = num_blocks - 1
    if need_mask:
        # Unmasked fast path for all full blocks; masked path only on the last
        # valid block. Padded blocks (block_idx > last) hit neither branch.
        @pl.when(block_idx < last)
        def _():
            accumulate(False)

        @pl.when(block_idx == last)
        def _():
            accumulate(True)
    elif padded:
        @pl.when(block_idx <= last)
        def _():
            accumulate(False)
    else:
        accumulate(False)


def charbonnier_loss(x, y, eps=1e-6, *, tile_rows=4096):
    """Charbonnier loss: sum(sqrt((x - y)^2 + eps)). Returns a scalar f32."""
    assert x.shape == y.shape, "x and y must have the same shape"
    n = x.size

    xf = jnp.ravel(x)
    yf = jnp.ravel(y)

    rows = n // LANES          # number of full 128-lane rows
    n_bulk = rows * LANES      # elements handled by the kernel
    tail = n - n_bulk          # < 128 leftover elements handled in plain JAX

    loss = jnp.float32(0.0)

    if rows > 0:
        # Dtype-aware sublane packing: 8 rows (f32), 16 (bf16), 32 (int8/fp8).
        min_itemsize = min(jnp.dtype(x.dtype).itemsize, jnp.dtype(y.dtype).itemsize)
        packing = max(1, 4 // max(1, min_itemsize))
        sub_mult = SUBLANES * packing

        rows_rounded = _round_up(rows, sub_mult)

        # Tile rows: requested size, sublane-aligned, capped at the data extent.
        tr_req = _round_up(max(int(tile_rows), sub_mult), sub_mult)
        tr = min(tr_req, rows_rounded)

        # Inner-loop chunk: largest divisor of tr that is <= 64 rows and a
        # multiple of the packed sublane tile (bounds vreg live range).
        chunk = sub_mult
        for cand in range(64, sub_mult - 1, -sub_mult):
            if tr % cand == 0:
                chunk = cand
                break

        num_blocks = pl.cdiv(rows, tr)

        # Megacore split: always give v7x's two TensorCores work. Padded block
        # indices are clamped in-range by the index_map and skipped in-kernel.
        P = 2 if num_blocks >= 2 else 1
        K = pl.cdiv(num_blocks, P)
        padded = (P * K) != num_blocks
        need_mask = (rows % tr) != 0

        if tail == 0:
            x2d = xf.reshape(rows, LANES)
            y2d = yf.reshape(rows, LANES)
        else:
            # TODO(synk): this prefix slice materializes an HBM copy of the bulk
            # for unaligned sizes; a 1-D-block kernel variant would avoid it.
            x2d = jax.lax.slice(xf, (0,), (n_bulk,)).reshape(rows, LANES)
            y2d = jax.lax.slice(yf, (0,), (n_bulk,)).reshape(rows, LANES)

        in_map = lambda p, k, K=K, nb=num_blocks: (jnp.minimum(p * K + k, nb - 1), 0)

        bytes_accessed = (n_bulk * (jnp.dtype(x.dtype).itemsize
                                    + jnp.dtype(y.dtype).itemsize)
                          + P * SUBLANES * LANES * 4)
        cost = pl.CostEstimate(
            flops=3 * n_bulk,            # sub, mul, add-eps (sqrt counted below)
            transcendentals=n_bulk,      # sqrt
            bytes_accessed=bytes_accessed,
        )

        out = pl.pallas_call(
            functools.partial(
                _charbonnier_kernel,
                eps=eps,
                n_rows=rows,
                tile_rows=tr,
                chunk=chunk,
                blocks_per_p=K,
                num_blocks=num_blocks,
                need_mask=need_mask,
                padded=padded,
            ),
            out_shape=jax.ShapeDtypeStruct((P, SUBLANES, LANES), jnp.float32),
            grid_spec=pltpu.PrefetchScalarGridSpec(
                num_scalar_prefetch=0,
                grid=(P, K),
                in_specs=[
                    pl.BlockSpec((tr, LANES), in_map),
                    pl.BlockSpec((tr, LANES), in_map),
                ],
                # Leading dim squeezed: kernel sees an (8, 128) accumulator.
                out_specs=pl.BlockSpec((None, SUBLANES, LANES),
                                       lambda p, k: (p, 0, 0)),
            ),
            compiler_params=pltpu.CompilerParams(
                dimension_semantics=("parallel", "arbitrary"),
            ),
            cost_estimate=cost,
        )(x2d, y2d)

        loss = loss + jnp.sum(out)

    if tail > 0:
        xt = jax.lax.slice(xf, (n_bulk,), (n,)).astype(jnp.float32)
        yt = jax.lax.slice(yf, (n_bulk,), (n,)).astype(jnp.float32)
        dt = xt - yt
        loss = loss + jnp.sum(jnp.sqrt(dt * dt + jnp.float32(eps)))

    return loss


def _ref_loss(x, y, eps=1e-6):
    d = x.astype(jnp.float32) - y.astype(jnp.float32)
    return jnp.sum(jnp.sqrt(d * d + jnp.float32(eps)))


if __name__ == "__main__":
    key = jax.random.PRNGKey(0)

    # 1) Primary case: NCHW, as PyTorch would pass (aligned: no mask, no tail).
    kx, ky = jax.random.split(key)
    x = jax.random.normal(kx, (2, 4, 16, 16), dtype=jnp.float32)
    y = jax.random.normal(ky, (2, 4, 16, 16), dtype=jnp.float32)
    loss = charbonnier_loss(x, y, eps=1e-6)
    jax.block_until_ready(loss)
    ref = _ref_loss(x, y, eps=1e-6)
    assert jnp.allclose(loss, ref, rtol=1e-5, atol=1e-3), (loss, ref)

    # 2) Unaligned case: exercises the gated partial-block mask + JAX tail.
    kx2, ky2 = jax.random.split(jax.random.PRNGKey(1))
    x2 = jax.random.normal(kx2, (1, 3, 37, 53), dtype=jnp.float32)
    y2 = jax.random.normal(ky2, (1, 3, 37, 53), dtype=jnp.float32)
    loss2 = charbonnier_loss(x2, y2, eps=1e-6)
    jax.block_until_ready(loss2)
    ref2 = _ref_loss(x2, y2, eps=1e-6)
    assert jnp.allclose(loss2, ref2, rtol=1e-5, atol=1e-3), (loss2, ref2)

    # 3) Multi-block case with a small forced tile: exercises the (P=2, K) grid.
    kx3, ky3 = jax.random.split(jax.random.PRNGKey(2))
    x3 = jax.random.normal(kx3, (2, 3, 32, 32), dtype=jnp.float32)
    y3 = jax.random.normal(ky3, (2, 3, 32, 32), dtype=jnp.float32)
    loss3 = charbonnier_loss(x3, y3, eps=1e-6, tile_rows=8)
    jax.block_until_ready(loss3)
    ref3 = _ref_loss(x3, y3, eps=1e-6)
    assert jnp.allclose(loss3, ref3, rtol=1e-5, atol=1e-3), (loss3, ref3)

    # 4) Odd block count: exercises padded (P*K > num_blocks) grid + in-kernel gate.
    kx4, ky4 = jax.random.split(jax.random.PRNGKey(3))
    x4 = jax.random.normal(kx4, (1, 5, 32, 32), dtype=jnp.float32)
    y4 = jax.random.normal(ky4, (1, 5, 32, 32), dtype=jnp.float32)
    loss4 = charbonnier_loss(x4, y4, eps=1e-6, tile_rows=8)
    jax.block_until_ready(loss4)
    ref4 = _ref_loss(x4, y4, eps=1e-6)
    assert jnp.allclose(loss4, ref4, rtol=1e-5, atol=1e-3), (loss4, ref4)

    # 5) bf16 inputs: exercises packed-sublane rounding + in-register upcast.
    kx5, ky5 = jax.random.split(jax.random.PRNGKey(4))
    x5 = jax.random.normal(kx5, (2, 4, 16, 16), dtype=jnp.bfloat16)
    y5 = jax.random.normal(ky5, (2, 4, 16, 16), dtype=jnp.bfloat16)
    loss5 = charbonnier_loss(x5, y5, eps=1e-6)
    jax.block_until_ready(loss5)
    ref5 = _ref_loss(x5, y5, eps=1e-6)
    assert jnp.allclose(loss5, ref5, rtol=1e-3, atol=1e-1), (loss5, ref5)

    print("KERNEL_OK")
</pallas_src>

<mosaic_0001>
module attributes {stable_mosaic.version = 11 : i64} {
  func.func @_charbonnier_kernel(%arg0: i32, %arg1: i32, %arg2: memref<16x128xf32, #tpu.memory_space<vmem>>, %arg3: memref<16x128xf32, #tpu.memory_space<vmem>>, %arg4: memref<1x8x128xf32, #tpu.memory_space<vmem>>) attributes {dimension_semantics = [#tpu.dimension_semantics<parallel>, #tpu.dimension_semantics<arbitrary>], iteration_bounds = array<i64: 1, 1>, scalar_prefetch = 0 : i64, scratch_operands = 0 : i64, tpu.core_type = #tpu.core_type<tc>, window_params = [{transform_indices = @transform_0, window_bounds = array<i64: 16, 128>}, {transform_indices = @transform_1, window_bounds = array<i64: 16, 128>}, {transform_indices = @transform_2, window_bounds = array<i64: 1, 8, 128>}]} {
    %c0_i32 = arith.constant 0 : i32
    %0 = arith.cmpi eq, %arg1, %c0_i32 : i32
    %1 = arith.extui %0 : i1 to i32
    %c0_i32_0 = arith.constant 0 : i32
    %2 = arith.cmpi ne, %1, %c0_i32_0 : i32
    scf.if %2 {
      %cst_11 = arith.constant 0.000000e+00 : f32
      %24 = vector.broadcast %cst_11 : f32 to vector<8x128xf32>
      %c0_12 = arith.constant 0 : index
      %c0_13 = arith.constant 0 : index
      %c0_14 = arith.constant 0 : index
      %25 = vector.load %arg4[%c0_12, %c0_13, %c0_14] : memref<1x8x128xf32, #tpu.memory_space<vmem>>, vector<1x8x128xf32>
      %26 = vector.shape_cast %25 : vector<1x8x128xf32> to vector<8x128xf32>
      %27 = vector.shape_cast %24 : vector<8x128xf32> to vector<1x8x128xf32>
      tpu.vector_store %arg4[%c0_12, %c0_13, %c0_14], %27 {strides = array<i32>} : memref<1x8x128xf32, #tpu.memory_space<vmem>>, vector<1x8x128xf32>,
    } else {
    }
    %cst = arith.constant 0.000000e+00 : f32
    %3 = vector.broadcast %cst : f32 to vector<8x128xf32>
    %c0_i32_1 = arith.constant 0 : i32
    %c16_i32 = arith.constant 16 : i32
    %4 = arith.muli %c0_i32_1, %c16_i32 : i32
    %5 = tpu.assume_multiple %4, 16 : i32
    %6 = arith.index_cast %5 : i32 to index
    %c0 = arith.constant 0 : index
    %7 = vector.load %arg2[%6, %c0] : memref<16x128xf32, #tpu.memory_space<vmem>>, vector<16x128xf32>
    %8 = arith.index_cast %5 : i32 to index
    %c0_2 = arith.constant 0 : index
    %9 = vector.load %arg3[%8, %c0_2] : memref<16x128xf32, #tpu.memory_space<vmem>>, vector<16x128xf32>
    %10 = arith.subf %7, %9 : vector<16x128xf32>
    %11 = arith.mulf %10, %10 : vector<16x128xf32>
    %cst_3 = arith.constant 9.99999997E-7 : f32
    %12 = vector.broadcast %cst_3 : f32 to vector<16x128xf32>
    %13 = arith.addf %11, %12 : vector<16x128xf32>
    %14 = math.sqrt %13 : vector<16x128xf32>
    %15 = vector.shape_cast %14 : vector<16x128xf32> to vector<2x8x128xf32>
    %cst_4 = arith.constant dense<0.000000e+00> : vector<8x128xf32>
    %16 = vector.multi_reduction <add>, %15, %cst_4 [0] : vector<2x8x128xf32> to vector<8x128xf32>
    %17 = arith.addf %3, %16 : vector<8x128xf32>
    %c1_i32 = arith.constant 1 : i32
    %c0_5 = arith.constant 0 : index
    %c0_6 = arith.constant 0 : index
    %c0_7 = arith.constant 0 : index
    %18 = vector.load %arg4[%c0_5, %c0_6, %c0_7] : memref<1x8x128xf32, #tpu.memory_space<vmem>>, vector<1x8x128xf32>
    %19 = vector.shape_cast %18 : vector<1x8x128xf32> to vector<8x128xf32>
    %20 = arith.addf %19, %17 : vector<8x128xf32>
    %c0_8 = arith.constant 0 : index
    %c0_9 = arith.constant 0 : index
    %c0_10 = arith.constant 0 : index
    %21 = vector.load %arg4[%c0_8, %c0_9, %c0_10] : memref<1x8x128xf32, #tpu.memory_space<vmem>>, vector<1x8x128xf32>
    %22 = vector.shape_cast %21 : vector<1x8x128xf32> to vector<8x128xf32>
    %23 = vector.shape_cast %20 : vector<8x128xf32> to vector<1x8x128xf32>
    tpu.vector_store %arg4[%c0_8, %c0_9, %c0_10], %23 {strides = array<i32>} : memref<1x8x128xf32, #tpu.memory_space<vmem>>, vector<1x8x128xf32>,
    return
  }
  func.func @transform_0(%arg0: i32, %arg1: i32) -> (i32, i32) {
    %c1_i32 = arith.constant 1 : i32
    %0 = arith.muli %arg0, %c1_i32 : i32
    %1 = arith.addi %0, %arg1 : i32
    %c0_i32 = arith.constant 0 : i32
    %2 = arith.minsi %1, %c0_i32 : i32
    %c0_i32_0 = arith.constant 0 : i32
    %c0_i32_1 = arith.constant 0 : i32
    return %2, %c0_i32_0 : i32, i32
  }
  func.func @transform_1(%arg0: i32, %arg1: i32) -> (i32, i32) {
    %c1_i32 = arith.constant 1 : i32
    %0 = arith.muli %arg0, %c1_i32 : i32
    %1 = arith.addi %0, %arg1 : i32
    %c0_i32 = arith.constant 0 : i32
    %2 = arith.minsi %1, %c0_i32 : i32
    %c0_i32_0 = arith.constant 0 : i32
    %c0_i32_1 = arith.constant 0 : i32
    return %2, %c0_i32_0 : i32, i32
  }
  func.func @transform_2(%arg0: i32, %arg1: i32) -> (i32, i32, i32) {
    %c0_i32 = arith.constant 0 : i32
    %c0_i32_0 = arith.constant 0 : i32
    %c0_i32_1 = arith.constant 0 : i32
    return %arg0, %c0_i32, %c0_i32_0 : i32, i32, i32
  }
}

</mosaic_0001>

<bundles_post_ra>
// kernel: tpu_custom_call.1
= control target key start
LH: loop header
LB: loop body
LE: loop exit
PB: predicated region body
PF: predicated region fallthrough
CT: control target
= control target key end

     0   :  { %7 = vsyncpa [#allocation3], 0  ;;  %s252_s0 = inlined_call_operand.hbm [shape: f32[16,128], index: 0, kind: input, shape index: {}]   ;;  %s253_s1 = inlined_call_operand.hbm [shape: f32[16,128], index: 1, kind: input, shape index: {}]   ;;  %s254_s2 = inlined_call_operand.hbm [shape: f32[1,8,128], index: 2, kind: output, shape index: {}]  }
   0x1   :  { %8 = vsyncpa [#allocation6], 0 }
   0x2   :  { %9 = vsyncpa [#allocation4], 0  ;;  %s196_s9 = smov [#allocation2]   ;;  %s124_s13 = scalar_lea.hbm %s252_s0, 256 }
   0x3   :  { %s21_s10 = sshll.u32 %s196_s9, 4  ;;  %p125_p0 = scmp.ne.s32.totalorder %s252_s0, %s124_s13  ;;  %s22_s10 = int_to_ptr.vmem [resolvable:$true] %s21_s10 }
   0x4   :  { %p128_p1 = scmp.lt.u32.totalorder %s124_s13, %s252_s0 }
   0x6   :  { %p130_p2 = pnand %p128_p1, %p125_p0 }
   0x8   :  { %133 = shalt.err (!%p130_p2)
}
   0x9   :  { %s134_s18 = scalar_lea.vmem %s22_s10, 256  ;;  %p139_p4 = scmp.lt.s32.totalorder %s22_s10, %s22_s10 }
   0xa   :  { %p135_p3 = scmp.ne.s32.totalorder %s22_s10, %s134_s18  ;;  %p140_p5 = scmp.lt.s32.totalorder %s134_s18, %s134_s18 }
   0xc   :  { %p141_p6 = por %p140_p5, %p139_p4 }
   0xe   :  { %p142_p7 = pnand %p141_p6, %p135_p3 }
  0x10   :  { %145 = shalt.err (!%p142_p7)
}
  0x11   :  { %s197_s19 = smov 128   ;;  %s198_s20 = smov 8  }
  0x12   :  { %27 = dma.hbm_to_vmem [thread:$0]  %s252_s0, 256, %s22_s10, [#allocation3], %s197_s19, %s197_s19, %s198_s20  }
  0x13   :  { %s199_s23 = smov [#allocation5]   ;;  %s146_s27 = scalar_lea.hbm %s253_s1, 256 }
  0x14   :  { %s39_s24 = sshll.u32 %s199_s23, 4  ;;  %p147_p8 = scmp.ne.s32.totalorder %s253_s1, %s146_s27  ;;  %s40_s24 = int_to_ptr.vmem [resolvable:$true] %s39_s24 }
  0x15   :  { %p150_p9 = scmp.lt.u32.totalorder %s146_s27, %s253_s1 }
  0x17   :  { %p152_p10 = pnand %p150_p9, %p147_p8 }
  0x19   :  { %155 = shalt.err (!%p152_p10)
}
  0x1a   :  { %s156_s4 = scalar_lea.vmem %s40_s24, 256  ;;  %p161_p12 = scmp.lt.s32.totalorder %s40_s24, %s40_s24 }
  0x1b   :  { %p157_p11 = scmp.ne.s32.totalorder %s40_s24, %s156_s4  ;;  %p162_p13 = scmp.lt.s32.totalorder %s156_s4, %s156_s4 }
  0x1d   :  { %p163_p0 = por %p162_p13, %p161_p12 }
  0x1f   :  { %p164_p1 = pnand %p163_p0, %p157_p11 }
  0x21   :  { %167 = shalt.err (!%p164_p1)
}
  0x22   :  { %45 = dma.hbm_to_vmem [thread:$0]  %s253_s1, 256, %s40_s24, [#allocation6], %s197_s19, %s197_s19, %s198_s20  }
  0x23   :  { %190 = dma.done.wait [#allocation3], 256  }
  0x24   :  { %191 = vsyncadd [#allocation3], 4294967040 }
  0x25   :  { %192 = dma.done.wait [#allocation6], 256  }
  0x26   :  { %193 = vsyncadd [#allocation6], 4294967040  ;;  %v65_v0 = vld [vmem:[#allocation2] sm:$0xff]  ;;  %v66_v1 = vld [vmem:[#allocation2 + $0x8] sm:$0xff]  ;;  %s200_s1 = smov [#allocation7]  }
  0x27   :  { %v67_v2 = vld [vmem:[#allocation5] sm:$0xff]  ;;  %v68_v3 = vld [vmem:[#allocation5 + $0x8] sm:$0xff]  ;;  %s100_s6 = sshll.u32 %s200_s1, 4  ;;  %s101_s6 = int_to_ptr.vmem [resolvable:$true] %s100_s6 }
  0x28   :  { %v69_v4 = vsub.f32 %v65_v0, %v67_v2  ;;  %v70_v5 = vsub.f32 %v66_v1, %v68_v3  ;;  %s168_s7 = scalar_lea.vmem %s101_s6, 128  ;;  %p173_p3 = scmp.lt.s32.totalorder %s101_s6, %s101_s6 }
  0x29   :  { %p169_p2 = scmp.ne.s32.totalorder %s101_s6, %s168_s7  ;;  %p174_p4 = scmp.lt.s32.totalorder %s168_s7, %s168_s7 }
  0x2a   :  { %v71_v6 = vmul.f32 %v69_v4, %v69_v4  ;;  %v72_v7 = vmul.f32 %v70_v5, %v70_v5 }
  0x2b   :  { %p175_p5 = por %p174_p4, %p173_p3 }
  0x2c   :  { %v73_v8 = vadd.f32 1e-06, %v71_v6  ;;  %v74_v9 = vadd.f32 1e-06, %v72_v7 }
  0x2d   :  { %p176_p6 = pnand %p175_p5, %p169_p2 }
  0x2e   :  { %120 = vrsqrt.f32 %v73_v8  ;;  %vm77_vm0 = vcmp.eq.f32.partialorder %v73_v8, inf  ;;  %v80_v11 = vand.u32 2147483648, %v73_v8  ;;  %vm79_vm1 = vcmp.eq.f32.partialorder %v73_v8, 0.0 }
  0x2f   :  { %122 = vrsqrt.f32 %v74_v9  ;;  %vm84_vm2 = vcmp.eq.f32.partialorder %v74_v9, inf  ;;  %v87_v14 = vand.u32 2147483648, %v74_v9  ;;  %vm86_vm3 = vcmp.eq.f32.partialorder %v74_v9, 0.0 }
  0x38   :  { %v121_v10 = vpop.eup %120 }
  0x39   :  { %v123_v12 = vpop.eup %122  ;;  %v76_v13 = vmul.f32 %v121_v10, %v73_v8 }
  0x3a   :  { %v83_v15 = vmul.f32 %v123_v12, %v74_v9 }
  0x3b   :  { %v78_v16 = vsel %vm77_vm0, %v73_v8, %v76_v13 }
  0x3c   :  { %v81_v17 = vsel %vm79_vm1, %v80_v11, %v78_v16  ;;  %v85_v18 = vsel %vm84_vm2, %v74_v9, %v83_v15 }
  0x3d   :  { %v88_v19 = vsel %vm86_vm3, %v87_v14, %v85_v18 }
  0x3e   :  { %v89_v20 = vadd.f32 %v88_v19, %v81_v17 }
  0x40   :  { %93 = vst [vmem:[#allocation7] sm:$0xff] %v89_v20 }
  0x41   :  { %179 = shalt.err (!%p176_p6)
}
  0x42   :  { %s180_s10 = scalar_lea.hbm %s254_s2, 128 }
  0x43   :  { %p181_p7 = scmp.ne.s32.totalorder %s254_s2, %s180_s10  ;;  %p184_p8 = scmp.lt.u32.totalorder %s180_s10, %s254_s2 }
  0x45   :  { %p186_p9 = pnand %p184_p8, %p181_p7 }
  0x47   :  { %189 = shalt.err (!%p186_p9)
}
  0x48   :  { %103 = dma.vmem_to_hbm [thread:$0]  %s101_s6, 128, %s254_s2, [#allocation4]  }
  0x49   :  { %194 = dma.done.wait [#allocation4], 128  }
  0x4a   :  { %195 = vsyncadd [#allocation4], 4294967168 }
  0x4b   :  { %107 = vsyncpa [#allocation3], 1 }
  0x4c   :  { %108 = vsyncpa [#allocation6], 1 }
  0x4d   :  { %109 = vsyncpa [#allocation4], 1 }

</bundles_post_ra>
